<compile_context>
chip_gen: v5e
topology: v5e:2x2
jax: 0.10.0
libtpu: 0.0.40
codegen_flags: <defaults>
</compile_context>

<pallas_src>
import functools

import jax
import jax.numpy as jnp
from jax.experimental import pallas as pl
from jax.experimental.pallas import tpu as pltpu


def _round_up(x, m):
    return ((x + m - 1) // m) * m


def fused_mlp_kernel(xn_ref, xc_ref,
                     w1n_ref, t1c_ref, b1_ref,
                     w2_ref, b2_ref,
                     w3_ref, b3_ref,
                     w4_ref, b4_ref,
                     w5_ref, b5_ref,
                     w6_ref, b6_ref,
                     o_ref, *, cat_offsets):
    """Fused embedding-gather + fc1..fc6 (+ReLU). One batch tile per grid step."""
    tb = xn_ref.shape[0]
    v_pad = t1c_ref.shape[0]

    # --- fused embedding lookup: multi-hot selector built on the VPU, gather on the MXU ---
    lane = jax.lax.broadcasted_iota(jnp.int32, (tb, v_pad), 1)
    cat_idx = xc_ref[...]                       # (tb, n_cat) int32
    hot = None
    for i, off in enumerate(cat_offsets):
        m = lane == (cat_idx[:, i:i + 1] + off)
        hot = m if hot is None else jnp.logical_or(hot, m)
    hot = jnp.where(hot, 1.0, 0.0).astype(jnp.bfloat16)

    # fc1 = x_num @ W1[:num_num]  +  multihot @ (E @ W1[num_num:])  +  b1
    h = jnp.dot(xn_ref[...], w1n_ref[...], preferred_element_type=jnp.float32)
    h = h + jnp.dot(hot, t1c_ref[...], preferred_element_type=jnp.float32)
    h = jnp.maximum(h + b1_ref[...], 0.0)       # bias add + ReLU stay f32 (v5e VPU)

    def layer(h, w_ref, b_ref, relu=True):
        y = jnp.dot(h.astype(jnp.bfloat16), w_ref[...],
                    preferred_element_type=jnp.float32) + b_ref[...]
        return jnp.maximum(y, 0.0) if relu else y

    h = layer(h, w2_ref, b2_ref)
    h = layer(h, w3_ref, b3_ref)
    h = layer(h, w4_ref, b4_ref)
    h = layer(h, w5_ref, b5_ref)
    o_ref[...] = layer(h, w6_ref, b6_ref, relu=False)   # (TB, 128) lane-dense slab


def neuralnet_forward(x_numerical, x_categorical, emb_tables, weights, biases,
                      *, block_b=128):
    """Reproduces NeuralNet.forward (eval mode) with one fused, batch-tiled Pallas kernel."""
    B, num_num = x_numerical.shape
    n_cat = x_categorical.shape[1]
    output_size = weights[-1].shape[1]

    # ---- fold the (tiny) embedding tables into fc1's categorical weight slice ----
    W1 = weights[0].astype(jnp.float32)                 # (num_num + sum(emb_dim), 256)
    d1 = W1.shape[1]
    d1p = _round_up(d1, 128)

    w1_num = jnp.zeros((num_num, d1p), jnp.float32).at[:, :d1].set(W1[:num_num])  # f32, tiny

    cat_offsets = []
    col, row = num_num, 0
    folded = []
    for t in emb_tables:
        v, d = t.shape
        folded.append((row, t.astype(jnp.float32) @ W1[col:col + d]))   # (v, d1)
        cat_offsets.append(row)
        row += v
        col += d
    v_pad = _round_up(max(row, 1), 128)
    t1_cat = jnp.zeros((v_pad, d1p), jnp.float32)
    for r0, f in folded:
        t1_cat = t1_cat.at[r0:r0 + f.shape[0], :d1].set(f)
    t1_cat = t1_cat.astype(jnp.bfloat16)

    b1 = jnp.zeros((1, d1p), jnp.float32).at[0, :d1].set(biases[0].astype(jnp.float32))

    # ---- fc2..fc6: zero-pad to 128-lane multiples; weights -> bf16, biases stay f32 ----
    params = [w1_num, t1_cat, b1]
    for w, b in zip(weights[1:], biases[1:]):
        din, dout = w.shape
        dinp, doutp = _round_up(din, 128), _round_up(dout, 128)
        wp = jnp.zeros((dinp, doutp), jnp.float32).at[:din, :dout].set(
            w.astype(jnp.float32)).astype(jnp.bfloat16)
        bp = jnp.zeros((1, doutp), jnp.float32).at[0, :dout].set(b.astype(jnp.float32))
        params += [wp, bp]
    out_pad = _round_up(output_size, 128)

    # ---- batch tiling: TB rows per grid step (multiple of 8), pad B if needed ----
    TB = _round_up(max(8, min(block_b, _round_up(B, 8))), 8)
    B_pad = _round_up(B, TB)
    xn = x_numerical.astype(jnp.float32)
    xc = x_categorical.astype(jnp.int32)
    if B_pad != B:
        xn = jnp.zeros((B_pad, num_num), jnp.float32).at[:B].set(xn)
        xc = jnp.zeros((B_pad, n_cat), jnp.int32).at[:B].set(xc)

    kernel = functools.partial(fused_mlp_kernel, cat_offsets=tuple(cat_offsets))

    out = pl.pallas_call(
        kernel,
        out_shape=jax.ShapeDtypeStruct((B_pad, out_pad), jnp.float32),
        grid=(B_pad // TB,),
        in_specs=[
            pl.BlockSpec((TB, num_num), lambda i: (i, 0)),   # x_numerical tile
            pl.BlockSpec((TB, n_cat), lambda i: (i, 0)),     # x_categorical tile (int32)
        ] + [pl.BlockSpec(p.shape, lambda i: (0, 0)) for p in params],  # resident params
        out_specs=pl.BlockSpec((TB, out_pad), lambda i: (i, 0)),        # lane-dense output
        compiler_params=pltpu.CompilerParams(
            dimension_semantics=("parallel",)),              # megacore split on v7x
    )(xn, xc, *params)

    return out[:B, :output_size]


if __name__ == "__main__":
    key = jax.random.PRNGKey(0)

    # --- synthetic problem configuration (small, consistent with the module shapes) ---
    batch = 16
    num_numerical_cols = 10
    cat_unique_counts = [4, 6, 3]          # len(data[col].unique()) per categorical column
    output_size = 1

    # embeddings: num_unique_values = unique + 1, emb_size = min(50, (num_unique_values + 1)//2)
    emb_tables, cat_vocab_sizes = [], []
    for n_unique in cat_unique_counts:
        key, k = jax.random.split(key)
        vocab = n_unique + 1
        emb_dim = min(50, (vocab + 1) // 2)
        cat_vocab_sizes.append(vocab)
        emb_tables.append(jax.random.normal(k, (vocab, emb_dim), jnp.float32))

    num_categorical_cols = sum(t.shape[1] for t in emb_tables)
    total_input_size = num_numerical_cols + num_categorical_cols

    # fc1..fc6 (PyTorch Linear stores (out, in); we keep (in, out) for the kernel)
    layer_dims = [total_input_size, 256, 128, 64, 32, 16, output_size]
    weights, biases = [], []
    for d_in, d_out in zip(layer_dims[:-1], layer_dims[1:]):
        key, kw, kb = jax.random.split(key, 3)
        bound = 1.0 / (d_in ** 0.5)        # PyTorch Linear default init range
        weights.append(jax.random.uniform(kw, (d_in, d_out), jnp.float32,
                                          minval=-bound, maxval=bound))
        biases.append(jax.random.uniform(kb, (d_out,), jnp.float32,
                                         minval=-bound, maxval=bound))

    # --- example inputs ---
    key, kn, kc = jax.random.split(key, 3)
    x_numerical = jax.random.normal(kn, (batch, num_numerical_cols), jnp.float32)
    x_categorical = jnp.stack(
        [jax.random.randint(jax.random.fold_in(kc, i), (batch,), 0, v)
         for i, v in enumerate(cat_vocab_sizes)],
        axis=1).astype(jnp.int32)

    # block_b=8 -> TB=8, grid=(2,): exercises the batch-tiled pipeline / parallel semantics.
    out = neuralnet_forward(x_numerical, x_categorical, emb_tables, weights, biases,
                            block_b=8)
    out = jax.block_until_ready(out)
    assert out.shape == (batch, output_size), out.shape

    # quick correctness check against a plain-JAX f32 reference
    def ref(xn, xc):
        emb = [jnp.take(t, xc[:, i], axis=0) for i, t in enumerate(emb_tables)]
        h = jnp.concatenate([xn] + emb, axis=1)
        for li, (w, b) in enumerate(zip(weights, biases)):
            h = h @ w + b
            if li < len(weights) - 1:
                h = jnp.maximum(h, 0.0)
        return h

    ref_out = ref(x_numerical, x_categorical)
    # bf16 MXU operands -> loosened tolerance vs. the exact f32 reference
    assert jnp.allclose(out, ref_out, atol=5e-2, rtol=5e-2), \
        float(jnp.max(jnp.abs(out - ref_out)))

    print("KERNEL_OK")
</pallas_src>

<mosaic_0001>
module attributes {stable_mosaic.version = 11 : i64} {
  func.func @fused_mlp_kernel(%arg0: i32, %arg1: memref<8x10xf32, #tpu.memory_space<vmem>>, %arg2: memref<8x3xi32, #tpu.memory_space<vmem>>, %arg3: memref<10x256xf32, #tpu.memory_space<vmem>>, %arg4: memref<128x256xbf16, #tpu.memory_space<vmem>>, %arg5: memref<1x256xf32, #tpu.memory_space<vmem>>, %arg6: memref<256x128xbf16, #tpu.memory_space<vmem>>, %arg7: memref<1x128xf32, #tpu.memory_space<vmem>>, %arg8: memref<128x128xbf16, #tpu.memory_space<vmem>>, %arg9: memref<1x128xf32, #tpu.memory_space<vmem>>, %arg10: memref<128x128xbf16, #tpu.memory_space<vmem>>, %arg11: memref<1x128xf32, #tpu.memory_space<vmem>>, %arg12: memref<128x128xbf16, #tpu.memory_space<vmem>>, %arg13: memref<1x128xf32, #tpu.memory_space<vmem>>, %arg14: memref<128x128xbf16, #tpu.memory_space<vmem>>, %arg15: memref<1x128xf32, #tpu.memory_space<vmem>>, %arg16: memref<8x128xf32, #tpu.memory_space<vmem>>) attributes {dimension_semantics = [#tpu.dimension_semantics<parallel>], iteration_bounds = array<i64: 2>, scalar_prefetch = 0 : i64, scratch_operands = 0 : i64, tpu.core_type = #tpu.core_type<tc>, window_params = [{transform_indices = @transform_0, window_bounds = array<i64: 8, 10>}, {transform_indices = @transform_1, window_bounds = array<i64: 8, 3>}, {pipeline_mode = #tpu.pipeline_mode<synchronous>, transform_indices = @transform_2, window_bounds = array<i64: 10, 256>}, {pipeline_mode = #tpu.pipeline_mode<synchronous>, transform_indices = @transform_3, window_bounds = array<i64: 128, 256>}, {pipeline_mode = #tpu.pipeline_mode<synchronous>, transform_indices = @transform_4, window_bounds = array<i64: 1, 256>}, {pipeline_mode = #tpu.pipeline_mode<synchronous>, transform_indices = @transform_5, window_bounds = array<i64: 256, 128>}, {pipeline_mode = #tpu.pipeline_mode<synchronous>, transform_indices = @transform_6, window_bounds = array<i64: 1, 128>}, {pipeline_mode = #tpu.pipeline_mode<synchronous>, transform_indices = @transform_7, window_bounds = array<i64: 128, 128>}, {pipeline_mode = #tpu.pipeline_mode<synchronous>, transform_indices = @transform_8, window_bounds = array<i64: 1, 128>}, {pipeline_mode = #tpu.pipeline_mode<synchronous>, transform_indices = @transform_9, window_bounds = array<i64: 128, 128>}, {pipeline_mode = #tpu.pipeline_mode<synchronous>, transform_indices = @transform_10, window_bounds = array<i64: 1, 128>}, {pipeline_mode = #tpu.pipeline_mode<synchronous>, transform_indices = @transform_11, window_bounds = array<i64: 128, 128>}, {pipeline_mode = #tpu.pipeline_mode<synchronous>, transform_indices = @transform_12, window_bounds = array<i64: 1, 128>}, {pipeline_mode = #tpu.pipeline_mode<synchronous>, transform_indices = @transform_13, window_bounds = array<i64: 128, 128>}, {pipeline_mode = #tpu.pipeline_mode<synchronous>, transform_indices = @transform_14, window_bounds = array<i64: 1, 128>}, {transform_indices = @transform_15, window_bounds = array<i64: 8, 128>}]} {
    %0 = tpu.iota {dimensions = array<i32: 1>} : vector<8x128xi32>
    %c0 = arith.constant 0 : index
    %c0_0 = arith.constant 0 : index
    %1 = vector.load %arg2[%c0, %c0_0] : memref<8x3xi32, #tpu.memory_space<vmem>>, vector<8x3xi32>
    %2 = vector.extract_strided_slice %1 {offsets = [0, 0], sizes = [8, 1], strides = [1, 1]} : vector<8x3xi32> to vector<8x1xi32>
    %c0_i32 = arith.constant 0 : i32
    %3 = vector.broadcast %c0_i32 : i32 to vector<8x1xi32>
    %4 = arith.addi %2, %3 : vector<8x1xi32>
    %5 = vector.broadcast %4 : vector<8x1xi32> to vector<8x128xi32>
    %6 = arith.cmpi eq, %0, %5 : vector<8x128xi32>
    %7 = vector.extract_strided_slice %1 {offsets = [0, 1], sizes = [8, 1], strides = [1, 1]} : vector<8x3xi32> to vector<8x1xi32>
    %c5_i32 = arith.constant 5 : i32
    %8 = vector.broadcast %c5_i32 : i32 to vector<8x1xi32>
    %9 = arith.addi %7, %8 : vector<8x1xi32>
    %10 = vector.broadcast %9 : vector<8x1xi32> to vector<8x128xi32>
    %11 = arith.cmpi eq, %0, %10 : vector<8x128xi32>
    %12 = arith.ori %6, %11 : vector<8x128xi1>
    %13 = vector.extract_strided_slice %1 {offsets = [0, 2], sizes = [8, 1], strides = [1, 1]} : vector<8x3xi32> to vector<8x1xi32>
    %c12_i32 = arith.constant 12 : i32
    %14 = vector.broadcast %c12_i32 : i32 to vector<8x1xi32>
    %15 = arith.addi %13, %14 : vector<8x1xi32>
    %16 = vector.broadcast %15 : vector<8x1xi32> to vector<8x128xi32>
    %17 = arith.cmpi eq, %0, %16 : vector<8x128xi32>
    %18 = arith.ori %12, %17 : vector<8x128xi1>
    %cst = arith.constant 1.000000e+00 : f32
    %cst_1 = arith.constant 0.000000e+00 : f32
    %19 = vector.broadcast %cst : f32 to vector<8x128xf32>
    %20 = vector.broadcast %cst_1 : f32 to vector<8x128xf32>
    %21 = arith.select %18, %19, %20 : vector<8x128xi1>, vector<8x128xf32>
    %22 = arith.truncf %21 : vector<8x128xf32> to vector<8x128xbf16>
    %c0_2 = arith.constant 0 : index
    %c0_3 = arith.constant 0 : index
    %23 = vector.load %arg1[%c0_2, %c0_3] : memref<8x10xf32, #tpu.memory_space<vmem>>, vector<8x10xf32>
    %c0_4 = arith.constant 0 : index
    %c0_5 = arith.constant 0 : index
    %24 = vector.load %arg3[%c0_4, %c0_5] : memref<10x256xf32, #tpu.memory_space<vmem>>, vector<10x256xf32>
    %cst_6 = arith.constant dense<0.000000e+00> : vector<8x256xf32>
    %25 = tpu.matmul %23, %24, %cst_6 {dimension_numbers = #tpu.dot_dimension_numbers<[1], [0], [0], [1], [0, 0, 1, 1], [], []>} : vector<8x10xf32>, vector<10x256xf32>, vector<8x256xf32> -> vector<8x256xf32>
    %c0_7 = arith.constant 0 : index
    %c0_8 = arith.constant 0 : index
    %26 = vector.load %arg4[%c0_7, %c0_8] : memref<128x256xbf16, #tpu.memory_space<vmem>>, vector<128x256xbf16>
    %cst_9 = arith.constant dense<0.000000e+00> : vector<8x256xf32>
    %27 = tpu.matmul %22, %26, %cst_9 {dimension_numbers = #tpu.dot_dimension_numbers<[1], [0], [0], [1], [0, 0, 1, 1], [], []>} : vector<8x128xbf16>, vector<128x256xbf16>, vector<8x256xf32> -> vector<8x256xf32>
    %28 = arith.addf %25, %27 : vector<8x256xf32>
    %c0_10 = arith.constant 0 : index
    %c0_11 = arith.constant 0 : index
    %29 = vector.load %arg5[%c0_10, %c0_11] : memref<1x256xf32, #tpu.memory_space<vmem>>, vector<1x256xf32>
    %30 = vector.broadcast %29 : vector<1x256xf32> to vector<8x256xf32>
    %31 = arith.addf %28, %30 : vector<8x256xf32>
    %cst_12 = arith.constant 0.000000e+00 : f32
    %32 = vector.broadcast %cst_12 : f32 to vector<8x256xf32>
    %33 = arith.maximumf %31, %32 : vector<8x256xf32>
    %34 = arith.truncf %33 : vector<8x256xf32> to vector<8x256xbf16>
    %c0_13 = arith.constant 0 : index
    %c0_14 = arith.constant 0 : index
    %35 = vector.load %arg6[%c0_13, %c0_14] : memref<256x128xbf16, #tpu.memory_space<vmem>>, vector<256x128xbf16>
    %cst_15 = arith.constant dense<0.000000e+00> : vector<8x128xf32>
    %36 = tpu.matmul %34, %35, %cst_15 {dimension_numbers = #tpu.dot_dimension_numbers<[1], [0], [0], [1], [0, 0, 1, 1], [], []>} : vector<8x256xbf16>, vector<256x128xbf16>, vector<8x128xf32> -> vector<8x128xf32>
    %c0_16 = arith.constant 0 : index
    %c0_17 = arith.constant 0 : index
    %37 = vector.load %arg7[%c0_16, %c0_17] : memref<1x128xf32, #tpu.memory_space<vmem>>, vector<1x128xf32>
    %38 = vector.broadcast %37 : vector<1x128xf32> to vector<8x128xf32>
    %39 = arith.addf %36, %38 : vector<8x128xf32>
    %cst_18 = arith.constant 0.000000e+00 : f32
    %40 = vector.broadcast %cst_18 : f32 to vector<8x128xf32>
    %41 = arith.maximumf %39, %40 : vector<8x128xf32>
    %42 = arith.truncf %41 : vector<8x128xf32> to vector<8x128xbf16>
    %c0_19 = arith.constant 0 : index
    %c0_20 = arith.constant 0 : index
    %43 = vector.load %arg8[%c0_19, %c0_20] : memref<128x128xbf16, #tpu.memory_space<vmem>>, vector<128x128xbf16>
    %cst_21 = arith.constant dense<0.000000e+00> : vector<8x128xf32>
    %44 = tpu.matmul %42, %43, %cst_21 {dimension_numbers = #tpu.dot_dimension_numbers<[1], [0], [0], [1], [0, 0, 1, 1], [], []>} : vector<8x128xbf16>, vector<128x128xbf16>, vector<8x128xf32> -> vector<8x128xf32>
    %c0_22 = arith.constant 0 : index
    %c0_23 = arith.constant 0 : index
    %45 = vector.load %arg9[%c0_22, %c0_23] : memref<1x128xf32, #tpu.memory_space<vmem>>, vector<1x128xf32>
    %46 = vector.broadcast %45 : vector<1x128xf32> to vector<8x128xf32>
    %47 = arith.addf %44, %46 : vector<8x128xf32>
    %cst_24 = arith.constant 0.000000e+00 : f32
    %48 = vector.broadcast %cst_24 : f32 to vector<8x128xf32>
    %49 = arith.maximumf %47, %48 : vector<8x128xf32>
    %50 = arith.truncf %49 : vector<8x128xf32> to vector<8x128xbf16>
    %c0_25 = arith.constant 0 : index
    %c0_26 = arith.constant 0 : index
    %51 = vector.load %arg10[%c0_25, %c0_26] : memref<128x128xbf16, #tpu.memory_space<vmem>>, vector<128x128xbf16>
    %cst_27 = arith.constant dense<0.000000e+00> : vector<8x128xf32>
    %52 = tpu.matmul %50, %51, %cst_27 {dimension_numbers = #tpu.dot_dimension_numbers<[1], [0], [0], [1], [0, 0, 1, 1], [], []>} : vector<8x128xbf16>, vector<128x128xbf16>, vector<8x128xf32> -> vector<8x128xf32>
    %c0_28 = arith.constant 0 : index
    %c0_29 = arith.constant 0 : index
    %53 = vector.load %arg11[%c0_28, %c0_29] : memref<1x128xf32, #tpu.memory_space<vmem>>, vector<1x128xf32>
    %54 = vector.broadcast %53 : vector<1x128xf32> to vector<8x128xf32>
    %55 = arith.addf %52, %54 : vector<8x128xf32>
    %cst_30 = arith.constant 0.000000e+00 : f32
    %56 = vector.broadcast %cst_30 : f32 to vector<8x128xf32>
    %57 = arith.maximumf %55, %56 : vector<8x128xf32>
    %58 = arith.truncf %57 : vector<8x128xf32> to vector<8x128xbf16>
    %c0_31 = arith.constant 0 : index
    %c0_32 = arith.constant 0 : index
    %59 = vector.load %arg12[%c0_31, %c0_32] : memref<128x128xbf16, #tpu.memory_space<vmem>>, vector<128x128xbf16>
    %cst_33 = arith.constant dense<0.000000e+00> : vector<8x128xf32>
    %60 = tpu.matmul %58, %59, %cst_33 {dimension_numbers = #tpu.dot_dimension_numbers<[1], [0], [0], [1], [0, 0, 1, 1], [], []>} : vector<8x128xbf16>, vector<128x128xbf16>, vector<8x128xf32> -> vector<8x128xf32>
    %c0_34 = arith.constant 0 : index
    %c0_35 = arith.constant 0 : index
    %61 = vector.load %arg13[%c0_34, %c0_35] : memref<1x128xf32, #tpu.memory_space<vmem>>, vector<1x128xf32>
    %62 = vector.broadcast %61 : vector<1x128xf32> to vector<8x128xf32>
    %63 = arith.addf %60, %62 : vector<8x128xf32>
    %cst_36 = arith.constant 0.000000e+00 : f32
    %64 = vector.broadcast %cst_36 : f32 to vector<8x128xf32>
    %65 = arith.maximumf %63, %64 : vector<8x128xf32>
    %66 = arith.truncf %65 : vector<8x128xf32> to vector<8x128xbf16>
    %c0_37 = arith.constant 0 : index
    %c0_38 = arith.constant 0 : index
    %67 = vector.load %arg14[%c0_37, %c0_38] : memref<128x128xbf16, #tpu.memory_space<vmem>>, vector<128x128xbf16>
    %cst_39 = arith.constant dense<0.000000e+00> : vector<8x128xf32>
    %68 = tpu.matmul %66, %67, %cst_39 {dimension_numbers = #tpu.dot_dimension_numbers<[1], [0], [0], [1], [0, 0, 1, 1], [], []>} : vector<8x128xbf16>, vector<128x128xbf16>, vector<8x128xf32> -> vector<8x128xf32>
    %c0_40 = arith.constant 0 : index
    %c0_41 = arith.constant 0 : index
    %69 = vector.load %arg15[%c0_40, %c0_41] : memref<1x128xf32, #tpu.memory_space<vmem>>, vector<1x128xf32>
    %70 = vector.broadcast %69 : vector<1x128xf32> to vector<8x128xf32>
    %71 = arith.addf %68, %70 : vector<8x128xf32>
    %c0_42 = arith.constant 0 : index
    %c0_43 = arith.constant 0 : index
    %72 = vector.load %arg16[%c0_42, %c0_43] : memref<8x128xf32, #tpu.memory_space<vmem>>, vector<8x128xf32>
    tpu.vector_store %arg16[%c0_42, %c0_43], %71 {strides = array<i32>} : memref<8x128xf32, #tpu.memory_space<vmem>>, vector<8x128xf32>,
    return
  }
  func.func @transform_0(%arg0: i32) -> (i32, i32) {
    %c0_i32 = arith.constant 0 : i32
    %c0_i32_0 = arith.constant 0 : i32
    return %arg0, %c0_i32 : i32, i32
  }
  func.func @transform_1(%arg0: i32) -> (i32, i32) {
    %c0_i32 = arith.constant 0 : i32
    %c0_i32_0 = arith.constant 0 : i32
    return %arg0, %c0_i32 : i32, i32
  }
  func.func @transform_2(%arg0: i32) -> (i32, i32) {
    %c0_i32 = arith.constant 0 : i32
    %c0_i32_0 = arith.constant 0 : i32
    %c0_i32_1 = arith.constant 0 : i32
    return %c0_i32, %c0_i32_0 : i32, i32
  }
  func.func @transform_3(%arg0: i32) -> (i32, i32) {
    %c0_i32 = arith.constant 0 : i32
    %c0_i32_0 = arith.constant 0 : i32
    %c0_i32_1 = arith.constant 0 : i32
    return %c0_i32, %c0_i32_0 : i32, i32
  }
  func.func @transform_4(%arg0: i32) -> (i32, i32) {
    %c0_i32 = arith.constant 0 : i32
    %c0_i32_0 = arith.constant 0 : i32
    %c0_i32_1 = arith.constant 0 : i32
    return %c0_i32, %c0_i32_0 : i32, i32
  }
  func.func @transform_5(%arg0: i32) -> (i32, i32) {
    %c0_i32 = arith.constant 0 : i32
    %c0_i32_0 = arith.constant 0 : i32
    %c0_i32_1 = arith.constant 0 : i32
    return %c0_i32, %c0_i32_0 : i32, i32
  }
  func.func @transform_6(%arg0: i32) -> (i32, i32) {
    %c0_i32 = arith.constant 0 : i32
    %c0_i32_0 = arith.constant 0 : i32
    %c0_i32_1 = arith.constant 0 : i32
    return %c0_i32, %c0_i32_0 : i32, i32
  }
  func.func @transform_7(%arg0: i32) -> (i32, i32) {
    %c0_i32 = arith.constant 0 : i32
    %c0_i32_0 = arith.constant 0 : i32
    %c0_i32_1 = arith.constant 0 : i32
    return %c0_i32, %c0_i32_0 : i32, i32
  }
  func.func @transform_8(%arg0: i32) -> (i32, i32) {
    %c0_i32 = arith.constant 0 : i32
    %c0_i32_0 = arith.constant 0 : i32
    %c0_i32_1 = arith.constant 0 : i32
    return %c0_i32, %c0_i32_0 : i32, i32
  }
  func.func @transform_9(%arg0: i32) -> (i32, i32) {
    %c0_i32 = arith.constant 0 : i32
    %c0_i32_0 = arith.constant 0 : i32
    %c0_i32_1 = arith.constant 0 : i32
    return %c0_i32, %c0_i32_0 : i32, i32
  }
  func.func @transform_10(%arg0: i32) -> (i32, i32) {
    %c0_i32 = arith.constant 0 : i32
    %c0_i32_0 = arith.constant 0 : i32
    %c0_i32_1 = arith.constant 0 : i32
    return %c0_i32, %c0_i32_0 : i32, i32
  }
  func.func @transform_11(%arg0: i32) -> (i32, i32) {
    %c0_i32 = arith.constant 0 : i32
    %c0_i32_0 = arith.constant 0 : i32
    %c0_i32_1 = arith.constant 0 : i32
    return %c0_i32, %c0_i32_0 : i32, i32
  }
  func.func @transform_12(%arg0: i32) -> (i32, i32) {
    %c0_i32 = arith.constant 0 : i32
    %c0_i32_0 = arith.constant 0 : i32
    %c0_i32_1 = arith.constant 0 : i32
    return %c0_i32, %c0_i32_0 : i32, i32
  }
  func.func @transform_13(%arg0: i32) -> (i32, i32) {
    %c0_i32 = arith.constant 0 : i32
    %c0_i32_0 = arith.constant 0 : i32
    %c0_i32_1 = arith.constant 0 : i32
    return %c0_i32, %c0_i32_0 : i32, i32
  }
  func.func @transform_14(%arg0: i32) -> (i32, i32) {
    %c0_i32 = arith.constant 0 : i32
    %c0_i32_0 = arith.constant 0 : i32
    %c0_i32_1 = arith.constant 0 : i32
    return %c0_i32, %c0_i32_0 : i32, i32
  }
  func.func @transform_15(%arg0: i32) -> (i32, i32) {
    %c0_i32 = arith.constant 0 : i32
    %c0_i32_0 = arith.constant 0 : i32
    return %arg0, %c0_i32 : i32, i32
  }
}

</mosaic_0001>

<bundles_post_ra>
// kernel: tpu_custom_call.1
= control target key start
LH: loop header
LB: loop body
LE: loop exit
PB: predicated region body
PF: predicated region fallthrough
CT: control target
= control target key end

     0   :  { %s2544_s0 = inlined_call_operand.vmem [shape: f32[16,10], index: 0, kind: input, shape index: {}]   ;;  %s2545_s1 = inlined_call_operand.vmem [shape: s32[16,3], index: 1, kind: input, shape index: {}]   ;;  %s2546_s2 = inlined_call_operand.hbm [shape: f32[10,256], index: 2, kind: input, shape index: {}]   ;;  %s2547_s3 = inlined_call_operand.hbm [shape: bf16[128,256], index: 3, kind: input, shape index: {}]   ;;  %s2548_s4 = inlined_call_operand.vmem [shape: f32[1,256], index: 4, kind: input, shape index: {}]   ;;  %s2549_s5 = inlined_call_operand.hbm [shape: bf16[256,128], index: 5, kind: input, shape index: {}]   ;;  %s2550_s6 = inlined_call_operand.vmem [shape: f32[1,128], index: 6, kind: input, shape index: {}]   ;;  %s2551_s7 = inlined_call_operand.hbm [shape: bf16[128,128], index: 7, kind: input, shape index: {}]   ;;  %s2552_s8 = inlined_call_operand.vmem [shape: f32[1,128], index: 8, kind: input, shape index: {}]   ;;  %s2553_s9 = inlined_call_operand.hbm [shape: bf16[128,128], index: 9, kind: input, shape index: {}]   ;;  %s2554_s10 = inlined_call_operand.vmem [shape: f32[1,128], index: 10, kind: input, shape index: {}]   ;;  %s2555_s11 = inlined_call_operand.hbm [shape: bf16[128,128], index: 11, kind: input, shape index: {}]   ;;  %s2556_s12 = inlined_call_operand.vmem [shape: f32[1,128], index: 12, kind: input, shape index: {}]   ;;  %s2557_s13 = inlined_call_operand.hbm [shape: bf16[128,128], index: 13, kind: input, shape index: {}]   ;;  %s2558_s14 = inlined_call_operand.vmem [shape: f32[1,128], index: 14, kind: input, shape index: {}]   ;;  %s2559_s15 = inlined_call_operand.hbm [shape: f32[16,128], index: 15, kind: output, shape index: {}]  }
   0x1   :  { %2568 = sst [smem:[#allocation27_spill]] %s2546_s2 }
   0x2   :  { %2569 = sst [smem:[#allocation28_spill]] %s2547_s3 }
   0x3   :  { %2570 = sst [smem:[#allocation29_spill]] %s2551_s7 }
   0x4   :  { %2571 = sst [smem:[#allocation30_spill]] %s2555_s11 }
   0x5   :  { %2572 = sst [smem:[#allocation31_spill]] %s2558_s14 }
   0x6   :  { %20 = vsyncpa [#allocation3], 0 }
   0x7   :  { %21 = vsyncpa [#allocation6], 0 }
   0x8   :  { %22 = vsyncpa [#allocation9], 0 }
   0x9   :  { %23 = vsyncpa [#allocation12], 0 }
   0xa   :  { %24 = vsyncpa [#allocation4], 0 }
   0xb   :  { %26 = vsyncpa [#allocation4 + $0x1], 0  ;;  %s2350_s18 = smov 0   ;;  %s2352_s19 = smov 0  }
   0xc   :  { %s2354_s20 = smov 0   ;;  %s2356_s21 = smov 0  }
   0xd LB: > { %2573 = sst [smem:[#allocation20_spill]] %s2239_s18  ;;  %s2371_s22 = sadd.s32 4294967295, %s2251_s21   ;;  %s2251_s21 = sphi %s2356_s21, %s2593_s21   ;;  %s2247_s20 = sphi %s2354_s20, %s2595_s20   ;;  %s2243_s19 = sphi %s2352_s19, %s2597_s19   ;;  %s2239_s18 = sphi %s2350_s18, %s2596_s18  }
   0xe   : > { %2574 = sst [smem:[#allocation21_spill]] %s2247_s20  ;;  %s1481_s23 = sadd.s32 4294967294, %s2251_s21  }
   0xf   : > { %2575 = sst [smem:[#allocation22_spill]] %s2251_s21  ;;  %s2375_s24 = sadd.s32 1, %s2251_s21  }
  0x10   : > { %2576 = sst [smem:[#allocation23_spill]] %s2375_s24  ;;  %s364_s25 = sadd.s32 1, %s2247_s20 }
  0x11   : > { %s361_s26 = ssub.s32 %s2251_s21, %s2375_s24  ;;  %p374_p0 = scmp.ne.s32.totalorder %s2247_s20, %s2243_s19 }
  0x12   : > { %p362_p1 = scmp.eq.s32.totalorder %s361_s26, 0  ;;  %p375_p2 = scmp.eq.s32.totalorder %s2371_s22, 1 }
  0x13   : > { %p380_p3 = scmp.ne.s32.totalorder %s2243_s19, %s2239_s18  ;;  %p381_p4 = scmp.eq.s32.totalorder %s1481_s23, 1 }
  0x14   : > { %s2386_s27 = scalar_select %p362_p1, %s2247_s20, %s364_s25  }
  0x15   : > { %p2388_p5 = por %p375_p2, %p374_p0  ;;  %p2392_p6 = por %p381_p4, %p380_p3 }
  0x16   : > { %2577 = sst [smem:[#allocation24_spill]] %s2386_s27  ;;  %p1482_p7 = scmp.ge.s32.totalorder %s2251_s21, 1 }
  0x17   : > { %s2578_s28 = scalar_select %p2388_p5, 1, 0 }
  0x18   : > { %s2580_s29 = scalar_select %p2392_p6, 1, 0 }
  0x19   : > { %2579 = sst [smem:[#allocation25_spill]] %s2578_s28  ;;  %p388_p8 = scmp.lt.s32.totalorder %s2251_s21, 3 }
  0x1a   : > { %2581 = sst [smem:[#allocation26_spill]] %s2580_s29  ;;  %p1890_p9 = scmp.eq.s32.totalorder %s2371_s22, 0 }
  0x1b   : > { %p2399_p10 = pnand %p1482_p7, %p388_p8  ;;  %s2583_s3 = sld [smem:[#allocation28_spill]] }
  0x1c   : > { %s2253_s25 = smov [#allocation5]   ;;  %s2585_s7 = sld [smem:[#allocation29_spill]] }
  0x1d   : > { %p1864_p11 = pneg %p2399_p10  ;;  %s415_s26 = sshll.u32 %s2253_s25, 4  ;;  %s416_s26 = int_to_ptr.vmem [resolvable:$true] %s415_s26 }
  0x1e   : > { %s2254_s16 = smov 128   ;;  %s2255_s17 = smov 8  }
  0x1f   : > { %p2410_p12 = pnand %p1890_p9, %p1864_p11  ;;  %s2586_s11 = sld [smem:[#allocation30_spill]] }
  0x20   : > { %s2257_s28 = smov 64   ;;  %s2258_s20 = smov 4  }
  0x21   : > { %s413_s23 = sshll.u32 %s2583_s3, 4  ;;  %s2256_s3 = smov [#allocation8]   ;;  %s414_s23 = int_to_ptr.hbm [resolvable:$true] %s413_s23 }
  0x22   : > { %s447_s29 = sshll.u32 %s2585_s7, 4  ;;  %s449_s25 = sshll.u32 %s2256_s3, 4  ;;  %s448_s29 = int_to_ptr.hbm [resolvable:$true] %s447_s29  ;;  %s450_s25 = int_to_ptr.vmem [resolvable:$true] %s449_s25 }
  0x23   : > { %1870 = dma.hbm_to_vmem [thread:$0]  (!%p2410_p12), %s414_s23, 2048, %s416_s26, [#allocation6], %s2254_s16, %s2254_s16, %s2255_s17  }
  0x24   : > { %1876 = dma.hbm_to_vmem [thread:$0]  (!%p2410_p12), %s448_s29, 1024, %s450_s25, [#allocation9], %s2257_s28, %s2257_s28, %s2258_s20  }
  0x25   : > { %s481_s14 = sshll.u32 %s2586_s11, 4  ;;  %s2587_s2 = sld [smem:[#allocation27_spill]]  ;;  %s482_s14 = int_to_ptr.hbm [resolvable:$true] %s481_s14 }
  0x26   : > { %s2259_s26 = smov [#allocation11]   ;;  %s2260_s18 = smov [#allocation2]  }
  0x27   : > { %s483_s3 = sshll.u32 %s2259_s26, 4  ;;  %s401_s21 = sshll.u32 %s2260_s18, 4  ;;  %s484_s3 = int_to_ptr.vmem [resolvable:$true] %s483_s3  ;;  %s402_s21 = int_to_ptr.vmem [resolvable:$true] %s401_s21 }
  0x28   : > { %1882 = dma.hbm_to_vmem [thread:$0]  (!%p2410_p12), %s482_s14, 1024, %s484_s3, [#allocation12], %s2257_s28, %s2257_s28, %s2258_s20  }
  0x29   : > { %s2261_s16 = smov 256   ;;  %s2262_s29 = smov 16  }
  0x2a   : > { %s430_s25 = sshll.u32 %s2549_s5, 4  ;;  %s2263_s24 = smov [#allocation7]   ;;  %s431_s25 = int_to_ptr.hbm [resolvable:$true] %s430_s25 }
  0x2b   : > { %s399_s23 = sshll.u32 %s2587_s2, 4  ;;  %s432_s26 = sshll.u32 %s2263_s24, 4  ;;  %s400_s23 = int_to_ptr.hbm [resolvable:$true] %s399_s23  ;;  %s433_s26 = int_to_ptr.vmem [resolvable:$true] %s432_s26 }
  0x2c   : > { %1867 = dma.hbm_to_vmem [thread:$0]  (!%p2410_p12), %s400_s23, 512, %s402_s21, [#allocation3], %s2261_s16, %s2261_s16, %s2262_s29  }
  0x2d   : > { %s464_s14 = sshll.u32 %s2553_s9, 4  ;;  %s2264_s23 = smov [#allocation10]   ;;  %s465_s14 = int_to_ptr.hbm [resolvable:$true] %s464_s14 }
  0x2e   : > { %1873 = dma.hbm_to_vmem [thread:$0]  (!%p2410_p12), %s431_s25, 2048, %s433_s26, [#allocation6], %s2257_s28, %s2257_s28, %s2258_s20  }
  0x2f   : > { %s466_s3 = sshll.u32 %s2264_s23, 4  ;;  %s498_s16 = sshll.u32 %s2557_s13, 4  ;;  %s467_s3 = int_to_ptr.vmem [resolvable:$true] %s466_s3  ;;  %s499_s16 = int_to_ptr.hbm [resolvable:$true] %s498_s16 }
  0x30   : > { %1879 = dma.hbm_to_vmem [thread:$0]  (!%p2410_p12), %s465_s14, 1024, %s467_s3, [#allocation9], %s2257_s28, %s2257_s28, %s2258_s20  }
  0x31   : > { %s2265_s2 = smov [#allocation13]   ;;  %533 = sbr.rel (%p2399_p10) target bundleno = 1012 (0x3f4), region = 80 }
  0x32   : > { %s500_s11 = sshll.u32 %s2265_s2, 4  ;;  %s501_s11 = int_to_ptr.vmem [resolvable:$true] %s500_s11 }
  0x33   : > { %1885 = dma.hbm_to_vmem [thread:$0]  (!%p2410_p12), %s499_s16, 1024, %s501_s11, [#allocation12], %s2257_s28, %s2257_s28, %s2258_s20  }
  0x36   : > { %2218 = dma.done.wait (%p1890_p9), [#allocation3], 512  }
  0x37   : > { %2220 = vsyncadd (%p1890_p9), [#allocation3], 4294966784 }
  0x38   : > { %2222 = dma.done.wait (%p1890_p9), [#allocation6], 4096  }
  0x39   : > { %2224 = vsyncadd (%p1890_p9), [#allocation6], 4294963200 }
  0x3a   : > { %2226 = dma.done.wait (%p1890_p9), [#allocation9], 2048  }
  0x3b   : > { %2228 = vsyncadd (%p1890_p9), [#allocation9], 4294965248 }
  0x3c   : > { %2230 = dma.done.wait (%p1890_p9), [#allocation12], 2048  }
  0x3d   : > { %2232 = vsyncadd (%p1890_p9), [#allocation12], 4294965248  ;;  %p615_p13 = scmp.lt.s32.totalorder %s2371_s22, 1  ;;  %v2266_v0 = vmov 0   ;;  %v2267_v1 = vmov 2   ;;  %v2268_v25 = vmov 1  }
  0x3e   : > { %1954 = vset.pattern.permute.xlu0 %v2266_v0  ;;  %1956 = vset.pattern.permute.xlu1 %v2267_v1  ;;  %v1560_v3 = vld [vmem:[#allocation5 + $0x70] sm:$0xf]  ;;  %v1785_v4 = vld [vmem:[#allocation5 + $0x74] sm:$0xf0]  ;;  %v1784_v7 = vld [vmem:[#allocation5 + $0x74] sm:$0xf] }
  0x3f   : > { %s2481_s27 = scalar_select %p615_p13, %s2371_s22, 1  ;;  %v1561_v6 = vor.u32 %v1785_v4, %v1560_v3  ;;  %v1562_v8 = vld [vmem:[#allocation5 + $0x78] sm:$0xf0]  ;;  %v1552_v10 = vld [vmem:[#allocation5 + $0x60] sm:$0xf]  ;;  %vm775_vm0 = vcmask 1041408  }
  0x40   : > { %v1565_v9 = vor.u32 %v1784_v7, %v1562_v8  ;;  %v1783_v11 = vld [vmem:[#allocation5 + $0x64] sm:$0xf0]  ;;  %v1782_v12 = vld [vmem:[#allocation5 + $0x64] sm:$0xf]  ;;  %v1554_v14 = vld [vmem:[#allocation5 + $0x68] sm:$0xf0]  ;;  %v623_v8 = vlaneseq }
  0x41   : > { %s1500_s28 = sshll.u32 %s2481_s27, 3  ;;  %745 = vmatpush.bf16.msra.mxu0 %v1561_v6  ;;  %v1553_v13 = vor.u32 %v1783_v11, %v1552_v10  ;;  %v1557_v15 = vor.u32 %v1782_v12, %v1554_v14  ;;  %v1544_v16 = vld [vmem:[#allocation5 + $0x50] sm:$0xf]  ;;  %v1781_v17 = vld [vmem:[#allocation5 + $0x54] sm:$0xf0]  ;;  %v645_v42 = vld [vmem:[#allocation2] sm:$0xff] }
  0x42   : > { %s622_s29 = scalar_lea.vmem %s2545_s1, %s1500_s28  ;;  %758 = vmatpush.bf16.msra.mxu1 %v1565_v9  ;;  %v1780_v18 = vld [vmem:[#allocation5 + $0x54] sm:$0xf]  ;;  %v1546_v19 = vld [vmem:[#allocation5 + $0x58] sm:$0xf0]  ;;  %v1536_v21 = vld [vmem:[#allocation5 + $0x40] sm:$0xf]  ;;  %v1545_v22 = vor.u32 %v1781_v17, %v1544_v16  ;;  %s618_s25 = scalar_lea.vmem %s2544_s0, %s1500_s28 }
  0x43   : > { %v625_v2 = vld [vmem:[%s622_s29] sm:$0xff]  ;;  %v1779_v23 = vld [vmem:[#allocation5 + $0x44] sm:$0xf0]  ;;  %v1549_v24 = vor.u32 %v1780_v18, %v1546_v19  ;;  %v1538_v27 = vld [vmem:[#allocation5 + $0x48] sm:$0xf0]  ;;  %vm771_vm1 = vcmask 80896  }
  0x44   : > { %627 = vperm.xlu0 %1954, %v625_v2   ;;  %v636_v5 = vadd.s32 12, %v625_v2  ;;  %v630_v20 = vadd.s32 5, %v625_v2  ;;  %v1778_v26 = vld [vmem:[#allocation5 + $0x44] sm:$0xf]  ;;  %v1537_v28 = vor.u32 %v1779_v23, %v1536_v21  ;;  %v1528_v30 = vld [vmem:[#allocation5 + $0x30] sm:$0xf] }
  0x45   : > { %746 = vmatpush.bf16.msra.mxu0 %v1553_v13  ;;  %v1541_v29 = vor.u32 %v1778_v26, %v1538_v27  ;;  %v1777_v31 = vld [vmem:[#allocation5 + $0x34] sm:$0xf0]  ;;  %v1776_v32 = vld [vmem:[#allocation5 + $0x34] sm:$0xf]  ;;  %v1530_v33 = vld [vmem:[#allocation5 + $0x38] sm:$0xf0] }
  0x46   : > { %638 = vperm.xlu1 %1956, %v636_v5   ;;  %759 = vmatpush.bf16.msra.mxu1 %v1557_v15  ;;  %v1529_v34 = vor.u32 %v1777_v31, %v1528_v30  ;;  %v1533_v35 = vor.u32 %v1776_v32, %v1530_v33  ;;  %v1520_v36 = vld [vmem:[#allocation5 + $0x20] sm:$0xf]  ;;  %v1775_v37 = vld [vmem:[#allocation5 + $0x24] sm:$0xf0]  ;;  %v1774_v38 = vld [vmem:[#allocation5 + $0x24] sm:$0xf] }
  0x47   : > { %v1521_v39 = vor.u32 %v1775_v37, %v1520_v36  ;;  %v1522_v40 = vld [vmem:[#allocation5 + $0x28] sm:$0xf0]  ;;  %v647_v41 = vld [vmem:[#allocation2 + $0x10] sm:$0x3]  ;;  %v648_v44 = vld [vmem:[#allocation2 + $0x18] sm:$0x3] }
  0x48   : > { %v1525_v43 = vor.u32 %v1774_v38, %v1522_v40  ;;  %1570 = vmatpush.msk.msra.mxu2 %vm775_vm0, %v647_v41  ;;  %v1512_v45 = vld [vmem:[#allocation5 + $0x10] sm:$0xf]  ;;  %v1773_v46 = vld [vmem:[#allocation5 + $0x14] sm:$0xf0]  ;;  %1572 = vmatpush.msk.msra.mxu3 %vm775_vm0, %v648_v44  ;;  %v1772_v48 = vld [vmem:[#allocation5 + $0x14] sm:$0xf] }
  0x49   : > { %747 = vmatpush.bf16.msra.mxu0 %v1545_v22  ;;  %v1513_v47 = vor.u32 %v1773_v46, %v1512_v45  ;;  %v1514_v49 = vld [vmem:[#allocation5 + $0x18] sm:$0xf0]  ;;  %v646_v50 = vld [vmem:[#allocation2 + $0x8] sm:$0xff]  ;;  %v644_v52 = vld [vmem:[%s618_s25] sm:$0xff]  ;;  %v624_v9 = vand.u32 127, %v623_v8  ;;  %s612_s27 = sand.u32 1, %s2243_s19  }
  0x4a   : > { %760 = vmatpush.bf16.msra.mxu1 %v1549_v24  ;;  %v1517_v51 = vor.u32 %v1772_v48, %v1514_v49  ;;  %797 = vmatpush.msra.mxu2 %v645_v42  ;;  %v1504_v53 = vld [vmem:[#allocation5] sm:$0xf]  ;;  %v1771_v54 = vld [vmem:[#allocation5 + $0x4] sm:$0xf0]  ;;  %v1770_v55 = vld [vmem:[#allocation5 + $0x4] sm:$0xf] }
  0x4b   : > { %817 = vmatpush.msra.mxu3 %v646_v50  ;;  %1571 = vmatmul.msk.f32.vlgmr.msra.gmra.mxu2 %vm771_vm1, %v644_v52  ;;  %v1505_v56 = vor.u32 %v1771_v54, %v1504_v53  ;;  %v1506_v57 = vld [vmem:[#allocation5 + $0x8] sm:$0xf0]  ;;  %v1793_v59 = vld [vmem:[#allocation7 + $0x38] sm:$0xff]  ;;  %v1792_v61 = vld [vmem:[#allocation7 + $0x30] sm:$0xff]  ;;  %v2269_v12 = vmov 1.0|1.0  }
  0x4c   : > { %1955 = vset.pattern.permute.xlu0 %v2268_v25  ;;  %1573 = vmatmul.msk.f32.vlgmr.msra.gmra.mxu3 %vm771_vm1, %v644_v52  ;;  %v1509_v58 = vor.u32 %v1770_v55, %v1506_v57  ;;  %v1801_v60 = vld [vmem:[#allocation7 + $0x78] sm:$0xff]  ;;  %v1800_v62 = vld [vmem:[#allocation7 + $0x70] sm:$0xff]  ;;  %v1791_v63 = vld [vmem:[#allocation7 + $0x28] sm:$0xff]  ;;  %s1767_s28 = sshll.u32 %s2371_s22, 3  ;;  %s1499_s30 = sshll.u32 %s612_s27, 3 }
  0x4d   : > { %632 = vperm.xlu0 %1955, %v630_v20   ;;  %748 = vmatpush.bf16.msra.mxu0 %v1537_v28  ;;  %v1799_v0 = vld [vmem:[#allocation7 + $0x68] sm:$0xff]  ;;  %v1798_v2 = vld [vmem:[#allocation7 + $0x60] sm:$0xff]  ;;  %v1789_v3 = vld [vmem:[#allocation7 + $0x18] sm:$0xff]  ;;  %s1336_s17 = scalar_lea.hbm %s2559_s15, %s1767_s28  ;;  %s2589_s26 = sld [smem:[#allocation31_spill]] }
  0x4e   : > { %761 = vmatpush.bf16.msra.mxu1 %v1541_v29  ;;  %966 = vmatpush.bf16.msrb.mxu2 %v1793_v59  ;;  %v1797_v4 = vld [vmem:[#allocation7 + $0x58] sm:$0xff]  ;;  %v1788_v6 = vld [vmem:[#allocation7 + $0x10] sm:$0xff]  ;;  %v1787_v13 = vld [vmem:[#allocation7 + $0x8] sm:$0xff]  ;;  %s614_s14 = scalar_lea.vmem [#allocation14], %s1499_s30  ;;  %s1340_s3 = sshll.u32 %s1336_s17, 4  ;;  %s1341_s3 = int_to_ptr.hbm [resolvable:$true] %s1340_s3 }
  0x4f   : > { %979 = vmatpush.bf16.msrb.mxu3 %v1801_v60  ;;  %v1796_v7 = vld [vmem:[#allocation7 + $0x50] sm:$0xff]  ;;  %v1795_v14 = vld [vmem:[#allocation7 + $0x48] sm:$0xff]  ;;  %v1786_v15 = vld [vmem:[#allocation7] sm:$0xff]  ;;  %s1338_s23 = sshll.u32 %s614_s14, 4  ;;  %s1326_s18 = scalar_lea.sflag [#allocation4], %s612_s27  ;;  %s1339_s23 = int_to_ptr.vmem [resolvable:$true] %s1338_s23 }
  0x50   : > { %v1794_v16 = vld [vmem:[#allocation7 + $0x40] sm:$0xff]  ;;  %v1809_v17 = vld [vmem:[#allocation8 + $0x38] sm:$0xff]  ;;  %v1808_v18 = vld [vmem:[#allocation8 + $0x30] sm:$0xff]  ;;  %s2187_s22 = sshra.s32 %s1341_s3, 4  ;;  %s2193_s11 = scalar_lea.hbm %s2559_s15, 16  ;;  %s2188_s22 = int_to_ptr.hbm [resolvable:$true] %s2187_s22 }
  0x51   : > { %749 = vmatpush.bf16.msra.mxu0 %v1529_v34  ;;  %v1807_v19 = vld [vmem:[#allocation8 + $0x28] sm:$0xff]  ;;  %v1806_v20 = vld [vmem:[#allocation8 + $0x20] sm:$0xff]  ;;  %v1805_v21 = vld [vmem:[#allocation8 + $0x18] sm:$0xff]  ;;  %s2189_s21 = scalar_lea.hbm %s2188_s22, 8  ;;  %p2194_p3 = scmp.lt.s32.totalorder %s2188_s22, %s2559_s15 }
  0x52   : > { %762 = vmatpush.bf16.msra.mxu1 %v1533_v35  ;;  %967 = vmatpush.bf16.msrb.mxu2 %v1792_v61  ;;  %v1804_v22 = vld [vmem:[#allocation8 + $0x10] sm:$0xff]  ;;  %v822_v23 = vld [vmem:[%s2548_s4] sm:$0x3]  ;;  %v1803_v40 = vld [vmem:[#allocation8 + $0x8] sm:$0xff]  ;;  %p2190_p0 = scmp.ne.s32.totalorder %s2188_s22, %s2189_s21  ;;  %p2195_p4 = scmp.lt.s32.totalorder %s2193_s11, %s2189_s21 }
  0x53   : > { %980 = vmatpush.bf16.msrb.mxu3 %v1800_v62  ;;  %v824_v26 = vperm.slane %v822_v23, 0  ;;  %v825_v27 = vperm.slane %v822_v23, 1  ;;  %v1802_v41 = vld [vmem:[#allocation8] sm:$0xff]  ;;  %v1817_v42 = vld [vmem:[#allocation10 + $0x38] sm:$0xff]  ;;  %v1815_v44 = vld [vmem:[#allocation10 + $0x28] sm:$0xff] }
  0x54   : > { %v1814_v45 = vld [vmem:[#allocation10 + $0x20] sm:$0xff]  ;;  %v1813_v46 = vld [vmem:[#allocation10 + $0x18] sm:$0xff]  ;;  %v1811_v57 = vld [vmem:[#allocation10 + $0x8] sm:$0xff]  ;;  %p2191_p1 = pnand %p2190_p0, %p2388_p5  ;;  %p2196_p7 = por %p2195_p4, %p2194_p3 }
  0x55   : > { %1957 = vset.pattern.permute.xlu0 %v2267_v1  ;;  %750 = vmatpush.bf16.msra.mxu0 %v1521_v39  ;;  %v1790_v1 = vld [vmem:[#allocation7 + $0x20] sm:$0xff]  ;;  %v1825_v59 = vld [vmem:[#allocation11 + $0x38] sm:$0xff]  ;;  %v1824_v60 = vld [vmem:[#allocation11 + $0x30] sm:$0xff] }
  0x56   : > { %763 = vmatpush.bf16.msra.mxu1 %v1525_v43  ;;  %968 = vmatpush.bf16.msrb.mxu2 %v1791_v63  ;;  %v1816_v43 = vld [vmem:[#allocation10 + $0x30] sm:$0xff]  ;;  %v1958_v48 = vld [vmem:[%s2550_s6] ss:$0 sm:$0xff]  ;;  %v1823_v61 = vld [vmem:[#allocation11 + $0x28] sm:$0xff]  ;;  %p2192_p2 = pneg %p2191_p1 }
  0x57   : > { %981 = vmatpush.bf16.msrb.mxu3 %v1799_v0  ;;  %v1822_v62 = vld [vmem:[#allocation11 + $0x20] sm:$0xff]  ;;  %v1821_v63 = vld [vmem:[#allocation11 + $0x18] sm:$0xff]  ;;  %v1820_v0 = vld [vmem:[#allocation11 + $0x10] sm:$0xff] }
  0x58   : > { %v1818_v8 = vld [vmem:[#allocation11] sm:$0xff]  ;;  %p2197_p8 = pnand %p2196_p7, %p2192_p2 }
  0x59   : > { %751 = vmatpush.bf16.msra.mxu0 %v1513_v47  ;;  %v1812_v47 = vld [vmem:[#allocation10 + $0x10] sm:$0xff]  ;;  %v1961_v23 = vld [vmem:[%s2556_s12] ss:$0 sm:$0xff] }
  0x5a   : > { %764 = vmatpush.bf16.msra.mxu1 %v1517_v51  ;;  %969 = vmatpush.bf16.msrb.mxu2 %v1790_v1  ;;  %v1959_v1 = vld [vmem:[%s2552_s8] ss:$0 sm:$0xff] }
  0x5b   : > { %982 = vmatpush.bf16.msrb.mxu3 %v1798_v2 }
  0x5d   : > { %752 = vmatpush.bf16.msra.mxu0 %v1505_v56 }
  0x5e   : > { %765 = vmatpush.bf16.msra.mxu1 %v1509_v58  ;;  %970 = vmatpush.bf16.msrb.mxu2 %v1789_v3  ;;  %v1810_v58 = vld [vmem:[#allocation10] sm:$0xff] }
  0x5f   : > { %983 = vmatpush.bf16.msrb.mxu3 %v1797_v4 }
  0x61   : > { %1062 = vmatpush.bf16.msrb.mxu0 %v1809_v17 }
  0x62   : > { %971 = vmatpush.bf16.msrb.mxu2 %v1788_v6  ;;  %1145 = vmatpush.bf16.msrb.mxu1 %v1817_v42 }
  0x63   : > { %984 = vmatpush.bf16.msrb.mxu3 %v1796_v7  ;;  %v1819_v7 = vld [vmem:[#allocation11 + $0x8] sm:$0xff] }
  0x65   : > { %1063 = vmatpush.bf16.msrb.mxu0 %v1808_v18 }
  0x66   : > { %972 = vmatpush.bf16.msrb.mxu2 %v1787_v13  ;;  %1146 = vmatpush.bf16.msrb.mxu1 %v1816_v43  ;;  %v1829_v13 = vld [vmem:[#allocation13 + $0x18] sm:$0xff] }
  0x67   : > { %985 = vmatpush.bf16.msrb.mxu3 %v1795_v14  ;;  %v1828_v14 = vld [vmem:[#allocation13 + $0x10] sm:$0xff] }
  0x69   : > { %1064 = vmatpush.bf16.msrb.mxu0 %v1807_v19 }
  0x6a   : > { %973 = vmatpush.bf16.msrb.mxu2 %v1786_v15  ;;  %1147 = vmatpush.bf16.msrb.mxu1 %v1815_v44  ;;  %v1960_v15 = vld [vmem:[%s2554_s10] ss:$0 sm:$0xff] }
  0x6b   : > { %986 = vmatpush.bf16.msrb.mxu3 %v1794_v16 }
  0x6d   : > { %1065 = vmatpush.bf16.msrb.mxu0 %v1806_v20 }
  0x6e   : > { %1148 = vmatpush.bf16.msrb.mxu1 %v1814_v45  ;;  %1228 = vmatpush.bf16.msra.mxu2 %v1825_v59 }
  0x71   : > { %1066 = vmatpush.bf16.msrb.mxu0 %v1805_v21  ;;  %v1827_v21 = vld [vmem:[#allocation13 + $0x8] sm:$0xff] }
  0x72   : > { %1149 = vmatpush.bf16.msrb.mxu1 %v1813_v46  ;;  %1229 = vmatpush.bf16.msra.mxu2 %v1824_v60 }
  0x75   : > { %1067 = vmatpush.bf16.msrb.mxu0 %v1804_v22  ;;  %v1826_v22 = vld [vmem:[#allocation13] sm:$0xff] }
  0x76   : > { %1150 = vmatpush.bf16.msrb.mxu1 %v1812_v47  ;;  %1230 = vmatpush.bf16.msra.mxu2 %v1823_v61 }
  0x79   : > { %1068 = vmatpush.bf16.msrb.mxu0 %v1803_v40 }
  0x7a   : > { %1151 = vmatpush.bf16.msrb.mxu1 %v1811_v57  ;;  %1231 = vmatpush.bf16.msra.mxu2 %v1822_v62 }
  0x7d   : > { %1069 = vmatpush.bf16.msrb.mxu0 %v1802_v41 }
  0x7e   : > { %1152 = vmatpush.bf16.msrb.mxu1 %v1810_v58  ;;  %1232 = vmatpush.bf16.msra.mxu2 %v1821_v63 }
  0x82   : > { %1233 = vmatpush.bf16.msra.mxu2 %v1820_v0 }
  0x86   : > { %1234 = vmatpush.bf16.msra.mxu2 %v1819_v7 }
  0x8a   : > { %1235 = vmatpush.bf16.msra.mxu2 %v1818_v8 }
  0xb6   : > { %v628_v5 = vpop.permute.xlu0 %627 }
  0xb7   : > { %vm629_vm3 = vcmp.eq.s32.totalorder %v624_v9, %v628_v5 }
  0xb8   : > { %v639_v10 = vpop.permute.xlu1 %638 }
  0xb9   : > { %vm640_vm2 = vcmp.eq.s32.totalorder %v624_v9, %v639_v10  ;;  %v1832_v10 = vld [vmem:[#allocation13 + $0x30] sm:$0xff] }
  0xbf   : > { %v633_v11 = vpop.permute.xlu0 %632 }
  0xc0   : > { %vm634_vm4 = vcmp.eq.s32.totalorder %v624_v9, %v633_v11  ;;  %v1833_v9 = vld [vmem:[#allocation13 + $0x38] sm:$0xff]  ;;  %v1831_v11 = vld [vmem:[#allocation13 + $0x28] sm:$0xff] }
  0xc1   : > { %vm635_vm5 = vmor %vm629_vm3, %vm634_vm4  ;;  %1311 = vmatpush.bf16.msra.mxu3 %v1833_v9 }
  0xc2   : > { %vm641_vm6 = vmor %vm635_vm5, %vm640_vm2 }
  0xc3   : > { %vm1566_vm7 = vmpackc.low %vm641_vm6, %vm641_vm6 }
  0xc4   : > { %1567 = vmatmul.msk.bf16.vlgmr.msra.gmra.mxu0 %vm1566_vm7, %v2269_v12  ;;  %1569 = vmatmul.msk.bf16.vlgmr.msra.gmra.mxu1 %vm1566_vm7, %v2269_v12  ;;  %v1830_v12 = vld [vmem:[#allocation13 + $0x20] sm:$0xff] }
  0xc5   : > { %1312 = vmatpush.bf16.msra.mxu3 %v1832_v10 }
  0xc9   : > { %1313 = vmatpush.bf16.msra.mxu3 %v1831_v11 }
  0xcd   : > { %1314 = vmatpush.bf16.msra.mxu3 %v1830_v12 }
  0xce   : > { %v799_v24 = vpop.f32.mrf.mxu2 }
  0xcf   : > { %v819_v25 = vpop.f32.mrf.mxu3 }
  0xd1   : > { %1315 = vmatpush.bf16.msra.mxu3 %v1829_v13 }
  0xd5   : > { %1316 = vmatpush.bf16.msra.mxu3 %v1828_v14 }
  0xd9   : > { %1317 = vmatpush.bf16.msra.mxu3 %v1827_v21 }
  0xdd   : > { %1318 = vmatpush.bf16.msra.mxu3 %v1826_v22 }
 0x141   : > { %v754_v28 = vpop.f32.mrf.mxu0  ;;  %v767_v29 = vpop.f32.mrf.mxu1 }
 0x142   : > { %v800_v30 = vadd.f32 %v799_v24, %v754_v28  ;;  %v820_v31 = vadd.f32 %v819_v25, %v767_v29  ;;  %v1962_v29 = vld [vmem:[%s2589_s26] ss:$0 sm:$0xff] }
 0x144   : > { %v828_v32 = vadd.f32 %v824_v26, %v800_v30  ;;  %v829_v33 = vadd.f32 %v825_v27, %v820_v31 }
 0x146   : > { %v830_v34 = vmax.f32 %v828_v32, 0.0  ;;  %v831_v35 = vmax.f32 %v829_v33, 0.0 }
 0x148   : > { %v832_v36 = vpack.c.bf16 %v830_v34, %v830_v34  ;;  %v833_v37 = vpack.c.bf16 %v831_v35, %v831_v35 }
 0x149   : > { %v756_v38 = vpop.f32.mrf.mxu0  ;;  %v769_v39 = vpop.f32.mrf.mxu1 }
 0x14a   : > { %974 = vmatmul.bf16.vlgmr.msrb.gmra.mxu2 %v832_v36  ;;  %987 = vmatmul.bf16.vlgmr.msrb.gmra.mxu3 %v833_v37 }
 0x1cd   : > { %v975_v49 = vpop.f32.mrf.mxu2  ;;  %v988_v50 = vpop.f32.mrf.mxu3 }
 0x1ce   : > { %v976_v51 = vadd.f32 %v1958_v48, %v975_v49 }
 0x1d0   : > { %v989_v52 = vadd.f32 %v988_v50, %v976_v51 }
 0x1d2   : > { %v992_v53 = vmax.f32 %v989_v52, 0.0 }
 0x1d4   : > { %v993_v54 = vpack.c.bf16 %v992_v53, %v992_v53 }
 0x1d5   : > { %v977_v55 = vpop.f32.mrf.mxu2  ;;  %v990_v56 = vpop.f32.mrf.mxu3 }
 0x1d6   : > { %1070 = vmatmul.bf16.vlgmr.msrb.gmra.mxu0 %v993_v54 }
 0x253   : > { %v1071_v2 = vpop.f32.mrf.mxu0 }
 0x254   : > { %v1072_v3 = vadd.f32 %v1959_v1, %v1071_v2 }
 0x256   : > { %v1075_v4 = vmax.f32 %v1072_v3, 0.0 }
 0x258   : > { %v1076_v5 = vpack.c.bf16 %v1075_v4, %v1075_v4 }
 0x25a   : > { %1153 = vmatmul.bf16.vlgmr.msrb.gmra.mxu1 %v1076_v5 }
 0x25b   : > { %v1073_v6 = vpop.f32.mrf.mxu0 }
 0x2d7   : > { %v1154_v16 = vpop.f32.mrf.mxu1 }
 0x2d8   : > { %v1155_v17 = vadd.f32 %v1960_v15, %v1154_v16 }
 0x2da   : > { %v1158_v18 = vmax.f32 %v1155_v17, 0.0 }
 0x2dc   : > { %v1159_v19 = vpack.c.bf16 %v1158_v18, %v1158_v18 }
 0x2de   : > { %1236 = vmatmul.bf16.vlgmr.msra.gmra.mxu2 %v1159_v19 }
 0x2df   : > { %v1156_v20 = vpop.f32.mrf.mxu1 }
 0x361   : > { %v1237_v24 = vpop.f32.mrf.mxu2 }
 0x362   : > { %v1238_v25 = vadd.f32 %v1961_v23, %v1237_v24 }
 0x364   : > { %v1241_v26 = vmax.f32 %v1238_v25, 0.0 }
 0x366   : > { %v1242_v27 = vpack.c.bf16 %v1241_v26, %v1241_v26 }
 0x368   : > { %1319 = vmatmul.bf16.vlgmr.msra.gmra.mxu3 %v1242_v27 }
 0x369   : > { %v1239_v28 = vpop.f32.mrf.mxu2 }
 0x3eb   : > { %v1320_v30 = vpop.f32.mrf.mxu3 }
 0x3ec   : > { %v1321_v31 = vadd.f32 %v1962_v29, %v1320_v30 }
 0x3ee   : > { %1324 = vst [vmem:[%s614_s14] sm:$0xff] %v1321_v31 }
 0x3ef   : > { %2200 = shalt.err (!%p2197_p8)
}
 0x3f0   : > { %1862 = dma.vmem_to_hbm [thread:$0]  (%p2388_p5), %s1339_s23, 128, %s1341_s3, %s1326_s18  }
 0x3f3   : > { %v1322_v32 = vpop.f32.mrf.mxu3 }
 0x3f4 PF: > { %s2590_s27 = sld [smem:[#allocation22_spill]] }
 0x3f5   : > { %s2591_s20 = sld [smem:[#allocation20_spill]] }
 0x3fa   : > { %p1904_p9 = scmp.ge.s32.totalorder %s2590_s27, 2 }
 0x3fb   : > { %s1352_s17 = sand.u32 1, %s2591_s20  }
 0x3fc   : > { %p1887_p10 = pnand %p1904_p9, %p2392_p6  ;;  %s1353_s25 = scalar_lea.sflag [#allocation4], %s1352_s17 }
 0x3fe   : > { %p1888_p11 = pneg %p1887_p10 }
 0x400   : > { %2234 = dma.done.wait (%p1888_p11), %s1353_s25, 128  }
 0x401   : > { %2236 = vsyncadd (%p1888_p11), %s1353_s25, 4294967168  ;;  %s2593_s21 = sld [smem:[#allocation23_spill]]  ;;  %s2596_s18 = smov %s2243_s19 }
 0x402   : > { %s2594_s24 = sld [smem:[#allocation21_spill]] }
 0x403   : > { %s2595_s20 = sld [smem:[#allocation24_spill]] }
 0x407   : > { %p29_p12 = scmp.ge.s32.totalorder %s2593_s21, 4  }
 0x408   : > { %s2597_s19 = smov %s2594_s24 }
 0x409   :  { %31 = sbr.rel (!%p29_p12) target bundleno = 13 (0xd), region = 147 }
 0x40e   :  { %1359 = vsyncpa [#allocation3], 1 }
 0x40f   :  { %1361 = vsyncpa [#allocation3 + $0x1], 1 }
 0x410   :  { %1362 = vsyncpa [#allocation6], 1 }
 0x411   :  { %1363 = vsyncpa [#allocation9], 1 }
 0x412   :  { %1364 = vsyncpa [#allocation12], 1 }
 0x413   :  { %1365 = vsyncpa [#allocation4], 1 }
 0x414   :  { %1367 = vsyncpa [#allocation4 + $0x1], 1 }

</bundles_post_ra>
